<compile_context>
chip_gen: v6e
topology: v6e:2x2x1
jax: 0.10.0
libtpu: 0.0.40
codegen_flags: <defaults>
</compile_context>

<pallas_src>
import math
import jax
import jax.numpy as jnp
from jax.experimental import pallas as pl
from jax.experimental.pallas import tpu as pltpu

BN_EPS = 1e-4                    # norm_fn = BatchNorm1d(eps=1e-4)
M_BASE = 32                      # m
UBLOCK_LAST = 3                  # ublock_layers[-1]
C_FEAT = UBLOCK_LAST * M_BASE    # 96 = ublock_layers[-1] * m
N_CLASSES = 20
W_CAT = 128                      # padded fused-matmul width (>= 96 + 20 = 116)
OUT_W = 24                       # packed output: [scores(20) | offsets(3) | 0]
MIN_TILE = 256
MAX_TILE = 2048


def _heads_kernel(x_ref, w_cat_ref, b_cat_ref, w_ol_ref, b_ol_ref, out_ref):
    """Fused output_layer + semantic head + offset head for one tile of voxels.

    w_cat = [ c*W_off | c*W_sem | 0-pad ]          (96,128) bf16   (c = 1/sqrt(1+eps))
    b_cat = [ b_off   | b_sem   | 0 ]              (1,128)  f32
    w_ol  = [ c*W_offset_linear | 0-pad ]          (96,128) bf16
    b_ol  = [ b_offset_linear   | 0 ]              (1,128)  f32
    """
    # output_layer = BN(eval, identity init) + ReLU; the BN scale is folded
    # into the downstream weights, so only the ReLU remains.  Input arrives in
    # f32 straight from the backbone (no wrapper cast pass); a single cast to
    # bf16 feeds the MXU (f32 accumulation).  f32 ReLU keeps the path v5e-safe.
    r = jnp.maximum(x_ref[...], 0.0).astype(jnp.bfloat16)

    # One 128-wide MXU matmul covering both x-side linears (shared LHS):
    #   lanes  0..95  -> offset-branch Linear pre-activation z
    #   lanes 96..115 -> semantic scores
    y = jnp.dot(r, w_cat_ref[...],
                preferred_element_type=jnp.float32) + b_cat_ref[...]
    z = y[:, :C_FEAT]
    scores = y[:, C_FEAT:C_FEAT + N_CLASSES]

    # offset head tail: BN(eval)+ReLU (scale folded into w_ol) -> Linear(->3, lane-padded)
    h = jnp.maximum(z, 0.0).astype(jnp.bfloat16)
    y2 = jnp.dot(h, w_ol_ref[...],
                 preferred_element_type=jnp.float32) + b_ol_ref[...]

    # Packed lane-contiguous bf16 output: [scores(20) | pt_offsets(3) | 0-pad(1)].
    # (w_ol / b_ol column 3 are zero, so y2[:, 3] == 0 cleanly fills the pad lane.)
    out_ref[:, :N_CLASSES] = scores.astype(out_ref.dtype)
    out_ref[:, N_CLASSES:OUT_W] = y2[:, :OUT_W - N_CLASSES].astype(out_ref.dtype)


def _pack_params(params):
    """Fold BN scales into the weights, concatenate/pad, cast weights to bf16."""
    w_sem, b_sem, w_off, b_off, w_ol, b_ol = params
    c = 1.0 / math.sqrt(1.0 + BN_EPS)

    w_cat = jnp.zeros((C_FEAT, W_CAT), jnp.float32)
    w_cat = w_cat.at[:, :C_FEAT].set(c * w_off)
    w_cat = w_cat.at[:, C_FEAT:C_FEAT + N_CLASSES].set(c * w_sem)
    b_cat = jnp.zeros((1, W_CAT), jnp.float32)
    b_cat = b_cat.at[:, :C_FEAT].set(b_off)
    b_cat = b_cat.at[:, C_FEAT:C_FEAT + N_CLASSES].set(b_sem)

    w_olp = jnp.zeros((C_FEAT, W_CAT), jnp.float32).at[:, :3].set(c * w_ol)
    b_olp = jnp.zeros((1, W_CAT), jnp.float32).at[:, :3].set(b_ol)

    return (w_cat.astype(jnp.bfloat16), b_cat,
            w_olp.astype(jnp.bfloat16), b_olp)


def _round_up(x, m):
    return ((x + m - 1) // m) * m


def _pick_tile(n_rows):
    """Rows per grid step.

    Large tiles amortize the ~0.35 us per-grid-step overhead, but we keep
    roughly >= 8 grid steps so the "parallel" axis can still be sharded across
    both v7x TensorCores; the tile never exceeds the (8-rounded) row count.
    """
    t = min(MAX_TILE, max(MIN_TILE, pl.next_power_of_2(pl.cdiv(max(n_rows, 1), 8))))
    return min(t, _round_up(n_rows, 8))


def pointgroup_heads(voxel_feats, p2v_map, params, *, tile=None):
    """Per-point semantic scores / preds / offsets from per-voxel backbone features.

    voxel_feats: (V, 96) f32 backbone voxel features (output of the sparse UNet).
    p2v_map:     (N,) int32 point -> voxel map (the module's `input_map`).

    The heads (BN+ReLU+Linear) are row-wise, so head(feats[p2v_map]) ==
    head(feats)[p2v_map]; we run the fused kernel over V voxel rows and gather
    the narrow packed (V, 24) result per point afterwards.
    """
    V, C = voxel_feats.shape
    assert C == C_FEAT
    w_cat, b_cat, w_olp, b_olp = _pack_params(params)
    if tile is None:
        tile = _pick_tile(V)

    full = lambda shape: pl.BlockSpec(shape, lambda i: (0, 0))
    packed = pl.pallas_call(
        _heads_kernel,
        out_shape=jax.ShapeDtypeStruct((V, OUT_W), jnp.bfloat16),
        grid=(pl.cdiv(V, tile),),          # ragged last block masked on writeback
        in_specs=[
            pl.BlockSpec((tile, C_FEAT), lambda i: (i, 0)),  # voxel features (f32)
            full((C_FEAT, W_CAT)), full((1, W_CAT)),         # fused x-side weights
            full((C_FEAT, W_CAT)), full((1, W_CAT)),         # padded offset_linear
        ],
        out_specs=pl.BlockSpec((tile, OUT_W), lambda i: (i, 0)),
        compiler_params=pltpu.CompilerParams(
            dimension_semantics=("parallel",)),
    )(voxel_feats, w_cat, b_cat, w_olp, b_olp)

    # Glue: per-point gather of the narrow packed head outputs (== the module's
    # `output.features[input_map]` followed by the heads, since they commute).
    per_point = jnp.take(packed, p2v_map, axis=0)
    semantic_scores = per_point[:, :N_CLASSES].astype(jnp.float32)
    pt_offsets = per_point[:, N_CLASSES:N_CLASSES + 3].astype(jnp.float32)
    semantic_preds = jnp.argmax(semantic_scores, axis=-1).astype(jnp.int32)
    return semantic_scores, semantic_preds, pt_offsets


def _torch_linear_init(key, fan_in, fan_out):
    """PyTorch nn.Linear default init: U(-1/sqrt(fan_in), 1/sqrt(fan_in))."""
    k = 1.0 / math.sqrt(fan_in)
    kw, kb = jax.random.split(key)
    w = jax.random.uniform(kw, (fan_in, fan_out), jnp.float32, -k, k)
    b = jax.random.uniform(kb, (1, fan_out), jnp.float32, -k, k)
    return w, b


def _reference_f32(voxel_feats, p2v_map, params):
    """Plain-JAX f32 reference of the exact module head semantics + ordering."""
    w_sem, b_sem, w_off, b_off, w_ol, b_ol = params
    inv_std = 1.0 / math.sqrt(1.0 + BN_EPS)
    a = jnp.maximum(voxel_feats * inv_std, 0.0)          # output_layer on voxels
    x = a[p2v_map]                                       # output.features[input_map]
    scores = x @ w_sem + b_sem
    preds = jnp.argmax(scores, axis=-1).astype(jnp.int32)
    h = jnp.maximum((x @ w_off + b_off) * inv_std, 0.0)  # offset = Linear+BN+ReLU
    offs = h @ w_ol + b_ol                               # offset_linear
    return scores, preds, offs


def _reference_kernel_math(voxel_feats, p2v_map, params):
    """Plain-JAX mirror of the kernel's exact math (bf16 operands/output, f32 accum)."""
    w_cat, b_cat, w_olp, b_olp = _pack_params(params)
    r = jnp.maximum(voxel_feats, 0.0).astype(jnp.bfloat16)
    y = jnp.dot(r, w_cat, preferred_element_type=jnp.float32) + b_cat
    scores = y[:, C_FEAT:C_FEAT + N_CLASSES].astype(jnp.bfloat16)
    h = jnp.maximum(y[:, :C_FEAT], 0.0).astype(jnp.bfloat16)
    y2 = jnp.dot(h, w_olp, preferred_element_type=jnp.float32) + b_olp
    offs = y2[:, :3].astype(jnp.bfloat16)
    return (scores.astype(jnp.float32)[p2v_map],
            offs.astype(jnp.float32)[p2v_map])


if __name__ == "__main__":
    key = jax.random.PRNGKey(0)
    k_feat, k_map, k_sem, k_off, k_ol = jax.random.split(key, 5)

    # Small synthetic shapes: 300 occupied voxels (NOT a multiple of the 256-row
    # tile -> exercises the masked ragged last block + 2 grid steps), 1000 points.
    n_voxels, n_points = 300, 1000
    voxel_output_feats = jax.random.normal(k_feat, (n_voxels, C_FEAT), jnp.float32)
    p2v_map = jax.random.randint(k_map, (n_points,), 0, n_voxels, jnp.int32)

    # Deterministic parameter init (shapes from PointGroupModule.__init__),
    # stored as (fan_in, fan_out).
    params = (
        *_torch_linear_init(k_sem, C_FEAT, N_CLASSES),   # self.linear
        *_torch_linear_init(k_off, C_FEAT, C_FEAT),      # self.offset[0] (Linear)
        *_torch_linear_init(k_ol, C_FEAT, 3),            # self.offset_linear
    )

    scores, preds, offs = pointgroup_heads(voxel_output_feats, p2v_map, params)
    jax.block_until_ready((scores, preds, offs))

    # 1) Tight check against a plain-JAX mirror of the kernel's exact math.
    q_scores, q_offs = _reference_kernel_math(voxel_output_feats, p2v_map, params)
    assert jnp.allclose(scores, q_scores, atol=2e-2, rtol=2e-2)
    assert jnp.allclose(offs, q_offs, atol=2e-2, rtol=2e-2)

    # 2) Loose check against exact f32 module semantics (bf16 matmul operands +
    #    bf16 packed output are an intentional ~0.5% relative-error source).
    f_scores, f_preds, f_offs = _reference_f32(voxel_output_feats, p2v_map, params)
    assert jnp.allclose(scores, f_scores, atol=6e-2, rtol=5e-2)
    assert jnp.allclose(offs, f_offs, atol=6e-2, rtol=5e-2)
    top2 = jnp.sort(f_scores, axis=-1)
    gap = top2[:, -1] - top2[:, -2]
    assert bool(jnp.all((preds == f_preds) | (gap < 5e-2)))   # tie-tolerant argmax check

    assert scores.shape == (n_points, N_CLASSES)
    assert preds.shape == (n_points,) and preds.dtype == jnp.int32
    assert offs.shape == (n_points, 3)

    print("KERNEL_OK")
</pallas_src>

<mosaic_0001>
module attributes {stable_mosaic.version = 11 : i64} {
  func.func @_heads_kernel(%arg0: i32, %arg1: memref<256x96xf32, #tpu.memory_space<vmem>>, %arg2: memref<96x128xbf16, #tpu.memory_space<vmem>>, %arg3: memref<1x128xf32, #tpu.memory_space<vmem>>, %arg4: memref<96x128xbf16, #tpu.memory_space<vmem>>, %arg5: memref<1x128xf32, #tpu.memory_space<vmem>>, %arg6: memref<256x24xbf16, #tpu.memory_space<vmem>>) attributes {dimension_semantics = [#tpu.dimension_semantics<parallel>], iteration_bounds = array<i64: 2>, scalar_prefetch = 0 : i64, scratch_operands = 0 : i64, tpu.core_type = #tpu.core_type<tc>, window_params = [{transform_indices = @transform_0, window_bounds = array<i64: 256, 96>}, {pipeline_mode = #tpu.pipeline_mode<synchronous>, transform_indices = @transform_1, window_bounds = array<i64: 96, 128>}, {pipeline_mode = #tpu.pipeline_mode<synchronous>, transform_indices = @transform_2, window_bounds = array<i64: 1, 128>}, {pipeline_mode = #tpu.pipeline_mode<synchronous>, transform_indices = @transform_3, window_bounds = array<i64: 96, 128>}, {pipeline_mode = #tpu.pipeline_mode<synchronous>, transform_indices = @transform_4, window_bounds = array<i64: 1, 128>}, {transform_indices = @transform_5, window_bounds = array<i64: 256, 24>}]} {
    %c0 = arith.constant 0 : index
    %c0_0 = arith.constant 0 : index
    %0 = vector.load %arg1[%c0, %c0_0] : memref<256x96xf32, #tpu.memory_space<vmem>>, vector<256x96xf32>
    %cst = arith.constant 0.000000e+00 : f32
    %1 = vector.broadcast %cst : f32 to vector<256x96xf32>
    %2 = arith.maximumf %0, %1 : vector<256x96xf32>
    %3 = arith.truncf %2 : vector<256x96xf32> to vector<256x96xbf16>
    %c0_1 = arith.constant 0 : index
    %c0_2 = arith.constant 0 : index
    %4 = vector.load %arg2[%c0_1, %c0_2] : memref<96x128xbf16, #tpu.memory_space<vmem>>, vector<96x128xbf16>
    %cst_3 = arith.constant dense<0.000000e+00> : vector<256x128xf32>
    %5 = tpu.matmul %3, %4, %cst_3 {dimension_numbers = #tpu.dot_dimension_numbers<[1], [0], [0], [1], [0, 0, 1, 1], [], []>} : vector<256x96xbf16>, vector<96x128xbf16>, vector<256x128xf32> -> vector<256x128xf32>
    %c0_4 = arith.constant 0 : index
    %c0_5 = arith.constant 0 : index
    %6 = vector.load %arg3[%c0_4, %c0_5] : memref<1x128xf32, #tpu.memory_space<vmem>>, vector<1x128xf32>
    %7 = vector.broadcast %6 : vector<1x128xf32> to vector<256x128xf32>
    %8 = arith.addf %5, %7 : vector<256x128xf32>
    %9 = vector.extract_strided_slice %8 {offsets = [0, 0], sizes = [256, 96], strides = [1, 1]} : vector<256x128xf32> to vector<256x96xf32>
    %10 = vector.extract_strided_slice %8 {offsets = [0, 96], sizes = [256, 20], strides = [1, 1]} : vector<256x128xf32> to vector<256x20xf32>
    %cst_6 = arith.constant 0.000000e+00 : f32
    %11 = vector.broadcast %cst_6 : f32 to vector<256x96xf32>
    %12 = arith.maximumf %9, %11 : vector<256x96xf32>
    %13 = arith.truncf %12 : vector<256x96xf32> to vector<256x96xbf16>
    %c0_7 = arith.constant 0 : index
    %c0_8 = arith.constant 0 : index
    %14 = vector.load %arg4[%c0_7, %c0_8] : memref<96x128xbf16, #tpu.memory_space<vmem>>, vector<96x128xbf16>
    %cst_9 = arith.constant dense<0.000000e+00> : vector<256x128xf32>
    %15 = tpu.matmul %13, %14, %cst_9 {dimension_numbers = #tpu.dot_dimension_numbers<[1], [0], [0], [1], [0, 0, 1, 1], [], []>} : vector<256x96xbf16>, vector<96x128xbf16>, vector<256x128xf32> -> vector<256x128xf32>
    %c0_10 = arith.constant 0 : index
    %c0_11 = arith.constant 0 : index
    %16 = vector.load %arg5[%c0_10, %c0_11] : memref<1x128xf32, #tpu.memory_space<vmem>>, vector<1x128xf32>
    %17 = vector.broadcast %16 : vector<1x128xf32> to vector<256x128xf32>
    %18 = arith.addf %15, %17 : vector<256x128xf32>
    %19 = arith.truncf %10 : vector<256x20xf32> to vector<256x20xbf16>
    %c0_12 = arith.constant 0 : index
    %c0_13 = arith.constant 0 : index
    %20 = vector.load %arg6[%c0_12, %c0_13] : memref<256x24xbf16, #tpu.memory_space<vmem>>, vector<256x20xbf16>
    tpu.vector_store %arg6[%c0_12, %c0_13], %19 {strides = array<i32>} : memref<256x24xbf16, #tpu.memory_space<vmem>>, vector<256x20xbf16>,
    %21 = vector.extract_strided_slice %18 {offsets = [0, 0], sizes = [256, 4], strides = [1, 1]} : vector<256x128xf32> to vector<256x4xf32>
    %22 = arith.truncf %21 : vector<256x4xf32> to vector<256x4xbf16>
    %c0_14 = arith.constant 0 : index
    %c20 = arith.constant 20 : index
    %23 = vector.load %arg6[%c0_14, %c20] : memref<256x24xbf16, #tpu.memory_space<vmem>>, vector<256x4xbf16>
    tpu.vector_store %arg6[%c0_14, %c20], %22 {strides = array<i32>} : memref<256x24xbf16, #tpu.memory_space<vmem>>, vector<256x4xbf16>,
    return
  }
  func.func @transform_0(%arg0: i32) -> (i32, i32) {
    %c0_i32 = arith.constant 0 : i32
    %c0_i32_0 = arith.constant 0 : i32
    return %arg0, %c0_i32 : i32, i32
  }
  func.func @transform_1(%arg0: i32) -> (i32, i32) {
    %c0_i32 = arith.constant 0 : i32
    %c0_i32_0 = arith.constant 0 : i32
    %c0_i32_1 = arith.constant 0 : i32
    return %c0_i32, %c0_i32_0 : i32, i32
  }
  func.func @transform_2(%arg0: i32) -> (i32, i32) {
    %c0_i32 = arith.constant 0 : i32
    %c0_i32_0 = arith.constant 0 : i32
    %c0_i32_1 = arith.constant 0 : i32
    return %c0_i32, %c0_i32_0 : i32, i32
  }
  func.func @transform_3(%arg0: i32) -> (i32, i32) {
    %c0_i32 = arith.constant 0 : i32
    %c0_i32_0 = arith.constant 0 : i32
    %c0_i32_1 = arith.constant 0 : i32
    return %c0_i32, %c0_i32_0 : i32, i32
  }
  func.func @transform_4(%arg0: i32) -> (i32, i32) {
    %c0_i32 = arith.constant 0 : i32
    %c0_i32_0 = arith.constant 0 : i32
    %c0_i32_1 = arith.constant 0 : i32
    return %c0_i32, %c0_i32_0 : i32, i32
  }
  func.func @transform_5(%arg0: i32) -> (i32, i32) {
    %c0_i32 = arith.constant 0 : i32
    %c0_i32_0 = arith.constant 0 : i32
    return %arg0, %c0_i32 : i32, i32
  }
}

</mosaic_0001>

<bundles_post_ra>
// kernel: tpu_custom_call.1
= control target key start
LH: loop header
LB: loop body
LE: loop exit
PB: predicated region body
PF: predicated region fallthrough
CT: control target
= control target key end

     0   :  { %s2249_s18 = smov 0   ;;  %s2251_s19 = smov 0   ;;  %s2792_s0 = inlined_call_operand.vmem [shape: f32[300,96], index: 0, kind: input, shape index: {}]   ;;  %s2793_s1 = inlined_call_operand.vmem [shape: bf16[96,128], index: 1, kind: input, shape index: {}]   ;;  %s2794_s2 = inlined_call_operand.vmem [shape: f32[1,128], index: 2, kind: input, shape index: {}]   ;;  %s2795_s3 = inlined_call_operand.vmem [shape: bf16[96,128], index: 3, kind: input, shape index: {}]   ;;  %s2796_s4 = inlined_call_operand.vmem [shape: f32[1,128], index: 4, kind: input, shape index: {}]   ;;  %s2797_s5 = inlined_call_operand.vmem [shape: bf16[300,24], index: 5, kind: output, shape index: {}]  }
   0x1   :  { %s2253_s20 = smov 0  }
   0x2 LB: > { %s2262_s21 = sadd.s32 4294967295, %s2183_s20   ;;  %s2264_s22 = sadd.s32 1, %s2183_s20   ;;  %s2183_s20 = sphi %s2253_s20, %s2804_s20   ;;  %s2179_s19 = sphi %s2251_s19, %s2803_s19   ;;  %s2175_s18 = sphi %s2249_s18, %s2802_s18  }
   0x3   : > { %s129_s23 = ssub.s32 %s2183_s20, %s2264_s22  ;;  %s132_s24 = sadd.s32 1, %s2179_s19 }
   0x4   : > { %p130_p0 = scmp.eq.s32.totalorder %s129_s23, 0  ;;  %p142_p1 = scmp.ne.s32.totalorder %s2179_s19, %s2175_s18 }
   0x5   : > { %p143_p2 = scmp.eq.s32.totalorder %s2262_s21, 1  ;;  %p1697_p3 = scmp.ge.s32.totalorder %s2183_s20, 1 }
   0x6   : > { %s2272_s25 = scalar_select %p130_p0, %s2179_s19, %s132_s24  }
   0x7   : > { %p2274_p4 = por %p143_p2, %p142_p1  ;;  %p196_p5 = scmp.lt.s32.totalorder %s2183_s20, 3 }
   0x9   : > { %p197_p6 = pnand %p1697_p3, %p196_p5 }
   0xa   : > { %s2282_s29 = sshll.u32 (!%p197_p6), %s2262_s21, 5  ;;  %s2217_s16 = smov (!%p197_p6), 32  }
   0xb   : > { %200 = sbr.rel (%p197_p6) target bundleno = 686 (0x2ae), region = 40  ;;  %p232_p7 = scmp.lt.s32.totalorder (!%p197_p6), %s2282_s29, 37 }
   0xc   : > { %s224_s17 = sand.u32 (!%p197_p6), 1, %s2175_s18   ;;  %s2218_s27 = smov (!%p197_p6), 20  }
   0xd   : > { %s1698_s20 = sshll.u32 (!%p197_p6), %s224_s17, 7 }
   0xe   : > { %s2458_s23 = scalar_lea.vmem (!%p197_p6), [#allocation2], %s1698_s20  }
  0x10   : > { %v2117_v0 = vld [vmem:[%s2793_s1 + $0x28] sm:$0xff]   ;;  %v2118_v1 = vld [vmem:[%s2793_s1 + $0x20] sm:$0xff]   ;;  %s233_s7 = scalar_select %p232_p7, %s2282_s29, 37  ;;  %v2119_v2 = vld [vmem:[%s2793_s1 + $0x18] sm:$0xff]   ;;  %vm382_vm0 = vcmask 785408   ;;  %vm1096_vm1 = vcmask 158720  }
  0x11   : > { %1939 = vmatprep.subr.bf16.mxu0 %v2117_v0  ;;  %v2123_v3 = vld [vmem:[%s2795_s3 + $0x28] sm:$0xff]   ;;  %v2120_v6 = vld [vmem:[%s2793_s1 + $0x10] sm:$0xff]   ;;  %v2122_v13 = vld [vmem:[%s2793_s1] sm:$0xff]   ;;  %vm1321_vm2 = vcmask 191648   ;;  %s1362_s28 = ssub.s32 (%p2274_p4), 38, %s2282_s29  ;;  %s1892_s30 = sshll.u32 (%p2274_p4), %s2262_s21, 7 }
  0x12   : > { %1940 = vmatpush3.bf16.msra.mxu0 %v2117_v0  ;;  %s1700_s10 = sshll.u32 %s233_s7, 3  ;;  %1983 = vmatprep.subr.bf16.mxu1 %v2123_v3  ;;  %v2121_v10 = vld [vmem:[%s2793_s1 + $0x8] sm:$0xff]   ;;  %v2124_v18 = vld [vmem:[%s2795_s3 + $0x20] sm:$0xff]   ;;  %v2125_v21 = vld [vmem:[%s2795_s3 + $0x18] sm:$0xff]   ;;  %p1363_p8 = scmp.lt.s32.totalorder (%p2274_p4), %s1362_s28, 32 }
  0x13   : > { %1941 = vmatprep.subr.bf16.mxu0 %v2118_v1  ;;  %s2295_s13 = scalar_lea.vmem %s2792_s0, %s1700_s10  ;;  %1984 = vmatpush3.bf16.msra.mxu1 %v2123_v3  ;;  %s2664_s8 = scalar_lea.vmem (%p2274_p4), %s2797_s5, %s1892_s30  }
  0x14   : > { %v247_v4 = vld [vmem:[%s2295_s13] sm:$0xff]  ;;  %v248_v5 = vld [vmem:[%s2295_s13 + $0x8] sm:$0xff]  ;;  %v249_v11 = vld [vmem:[%s2295_s13 + $0x10] sm:$0xff]  ;;  %1985 = vmatprep.subr.bf16.mxu1 %v2124_v18 }
  0x15   : > { %v279_v7 = vmax.f32 %v247_v4, 0.0  ;;  %v280_v8 = vmax.f32 %v248_v5, 0.0  ;;  %v250_v12 = vld [vmem:[%s2295_s13 + $0x18] sm:$0xff]  ;;  %v251_v14 = vld [vmem:[%s2295_s13 + $0x20] sm:$0xff]  ;;  %v252_v15 = vld [vmem:[%s2295_s13 + $0x28] sm:$0xff]  ;;  %v281_v16 = vmax.f32 %v249_v11, 0.0 }
  0x16   : > { %1942 = vmatpush3.bf16.msra.mxu0 %v2118_v1  ;;  %v282_v17 = vmax.f32 %v250_v12, 0.0  ;;  %v283_v19 = vmax.f32 %v251_v14, 0.0  ;;  %v284_v20 = vmax.f32 %v252_v15, 0.0  ;;  %v253_v24 = vld [vmem:[%s2295_s13 + $0x30] sm:$0xff]  ;;  %v254_v25 = vld [vmem:[%s2295_s13 + $0x38] sm:$0xff]  ;;  %v255_v26 = vld [vmem:[%s2295_s13 + $0x40] sm:$0xff] }
  0x17   : > { %1943 = vmatprep.subr.bf16.mxu0 %v2119_v2  ;;  %v311_v9 = vpack.c.bf16 %v280_v8, %v279_v7  ;;  %1986 = vmatpush3.bf16.msra.mxu1 %v2124_v18  ;;  %v256_v27 = vld [vmem:[%s2295_s13 + $0x48] sm:$0xff]  ;;  %v285_v28 = vmax.f32 %v253_v24, 0.0  ;;  %v286_v29 = vmax.f32 %v254_v25, 0.0  ;;  %v287_v30 = vmax.f32 %v255_v26, 0.0  ;;  %v257_v34 = vld [vmem:[%s2295_s13 + $0x50] sm:$0xff]  ;;  %v258_v35 = vld [vmem:[%s2295_s13 + $0x58] sm:$0xff] }
  0x18   : > { %v312_v22 = vpack.c.bf16 %v282_v17, %v281_v16  ;;  %1987 = vmatprep.subr.bf16.mxu1 %v2125_v21  ;;  %v313_v23 = vpack.c.bf16 %v284_v20, %v283_v19  ;;  %v288_v31 = vmax.f32 %v256_v27, 0.0  ;;  %v259_v36 = vld [vmem:[%s2295_s13 + $0x60] sm:$0xff]  ;;  %v260_v37 = vld [vmem:[%s2295_s13 + $0x68] sm:$0xff]  ;;  %v289_v38 = vmax.f32 %v257_v34, 0.0  ;;  %v261_v44 = vld [vmem:[%s2295_s13 + $0x70] sm:$0xff] }
  0x19   : > { %1951 = vmatprep.mubr.msk.bf16.mxu0 %vm382_vm0, %v311_v9  ;;  %v314_v32 = vpack.c.bf16 %v286_v29, %v285_v28  ;;  %v290_v39 = vmax.f32 %v258_v35, 0.0  ;;  %v291_v40 = vmax.f32 %v259_v36, 0.0  ;;  %v292_v41 = vmax.f32 %v260_v37, 0.0  ;;  %v262_v45 = vld [vmem:[%s2295_s13 + $0x78] sm:$0xff]  ;;  %v263_v46 = vld [vmem:[%s2295_s13 + $0x80] sm:$0xff]  ;;  %v264_v47 = vld [vmem:[%s2295_s13 + $0x88] sm:$0xff] }
  0x1a   : > { %1944 = vmatpush3.bf16.msra.mxu0 %v2119_v2  ;;  %v315_v33 = vpack.c.bf16 %v288_v31, %v287_v30  ;;  %v293_v48 = vmax.f32 %v261_v44, 0.0  ;;  %v294_v49 = vmax.f32 %v262_v45, 0.0  ;;  %v295_v50 = vmax.f32 %v263_v46, 0.0  ;;  %v265_v54 = vld [vmem:[%s2295_s13 + $0x90] sm:$0xff]  ;;  %v266_v55 = vld [vmem:[%s2295_s13 + $0x98] sm:$0xff]  ;;  %v267_v56 = vld [vmem:[%s2295_s13 + $0xa0] sm:$0xff] }
  0x1b   : > { %1945 = vmatprep.subr.bf16.mxu0 %v2120_v6  ;;  %1988 = vmatpush3.bf16.msra.mxu1 %v2125_v21  ;;  %v316_v42 = vpack.c.bf16 %v290_v39, %v289_v38  ;;  %v317_v43 = vpack.c.bf16 %v292_v41, %v291_v40  ;;  %v296_v51 = vmax.f32 %v264_v47, 0.0  ;;  %v268_v57 = vld [vmem:[%s2295_s13 + $0xa8] sm:$0xff]  ;;  %v297_v58 = vmax.f32 %v265_v54, 0.0  ;;  %v269_v0 = vld [vmem:[%s2295_s13 + $0xb0] sm:$0xff]  ;;  %v270_v1 = vld [vmem:[%s2295_s13 + $0xb8] sm:$0xff] }
  0x1c   : > { %v318_v52 = vpack.c.bf16 %v294_v49, %v293_v48  ;;  %v298_v59 = vmax.f32 %v266_v55, 0.0  ;;  %v299_v60 = vmax.f32 %v267_v56, 0.0  ;;  %v300_v61 = vmax.f32 %v268_v57, 0.0  ;;  %v271_v2 = vld [vmem:[%s2295_s13 + $0xc0] sm:$0xff]  ;;  %v272_v3 = vld [vmem:[%s2295_s13 + $0xc8] sm:$0xff]  ;;  %v274_v11 = vld [vmem:[%s2295_s13 + $0xd8] sm:$0xff] }
  0x1d   : > { %v319_v53 = vpack.c.bf16 %v296_v51, %v295_v50  ;;  %v301_v4 = vmax.f32 %v269_v0, 0.0  ;;  %v302_v5 = vmax.f32 %v270_v1, 0.0  ;;  %v304_v7 = vmax.f32 %v272_v3, 0.0  ;;  %v275_v12 = vld [vmem:[%s2295_s13 + $0xe0] sm:$0xff]  ;;  %v277_v20 = vld [vmem:[%s2295_s13 + $0xf0] sm:$0xff]  ;;  %v278_v21 = vld [vmem:[%s2295_s13 + $0xf8] sm:$0xff] }
  0x1e   : > { %1946 = vmatpush3.bf16.msra.mxu0 %v2120_v6  ;;  %v320_v62 = vpack.c.bf16 %v298_v59, %v297_v58  ;;  %v321_v63 = vpack.c.bf16 %v300_v61, %v299_v60  ;;  %v303_v6 = vmax.f32 %v271_v2, 0.0  ;;  %v306_v15 = vmax.f32 %v274_v11, 0.0  ;;  %v2126_v25 = vld [vmem:[%s2795_s3 + $0x10] sm:$0xff]   ;;  %v2127_v26 = vld [vmem:[%s2795_s3 + $0x8] sm:$0xff]   ;;  %v2128_v27 = vld [vmem:[%s2795_s3] sm:$0xff]  }
  0x1f   : > { %1947 = vmatprep.subr.bf16.mxu0 %v2121_v10  ;;  %v322_v8 = vpack.c.bf16 %v302_v5, %v301_v4  ;;  %v307_v16 = vmax.f32 %v275_v12, 0.0  ;;  %1989 = vmatprep.subr.bf16.mxu1 %v2126_v25  ;;  %v2375_v28 = vld [vmem:[%s2794_s2] ss:$0 sm:$0xff] }
  0x20   : > { %v323_v9 = vpack.c.bf16 %v304_v7, %v303_v6  ;;  %1990 = vmatpush3.bf16.msra.mxu1 %v2126_v25 }
  0x21   : > { %1991 = vmatprep.subr.bf16.mxu1 %v2127_v26 }
  0x22   : > { %1948 = vmatpush3.bf16.msra.mxu0 %v2121_v10  ;;  %v273_v10 = vld [vmem:[%s2295_s13 + $0xd0] sm:$0xff] }
  0x23   : > { %1949 = vmatprep.subr.bf16.mxu0 %v2122_v13  ;;  %v305_v14 = vmax.f32 %v273_v10, 0.0 }
  0x24   : > { %1992 = vmatpush3.bf16.msra.mxu1 %v2127_v26 }
  0x25   : > { %v324_v18 = vpack.c.bf16 %v306_v15, %v305_v14  ;;  %1993 = vmatprep.subr.bf16.mxu1 %v2128_v27 }
  0x26   : > { %1950 = vmatpush3.bf16.msra.mxu0 %v2122_v13  ;;  %v276_v13 = vld [vmem:[%s2295_s13 + $0xe8] sm:$0xff] }
  0x27   : > { %v308_v17 = vmax.f32 %v276_v13, 0.0 }
  0x28   : > { %1994 = vmatpush3.bf16.msra.mxu1 %v2128_v27 }
  0x29   : > { %1952 = vmatmul.mubr.msk.bf16.vlgmr.msra.gmra.mxu0 %vm382_vm0, %v312_v22  ;;  %v325_v19 = vpack.c.bf16 %v308_v17, %v307_v16  ;;  %v309_v22 = vmax.f32 %v277_v20, 0.0 }
  0x2a   : > { %1955 = vmatprep.mubr.msk.bf16.mxu0 %vm382_vm0, %v313_v23  ;;  %v310_v23 = vmax.f32 %v278_v21, 0.0 }
  0x2c   : > { %v326_v24 = vpack.c.bf16 %v310_v23, %v309_v22 }
  0x31   : > { %1956 = vmatmul.mubr.msk.bf16.gmra.mxu0 %vm382_vm0, %v314_v32 }
  0x32   : > { %1959 = vmatprep.mubr.msk.bf16.mxu0 %vm382_vm0, %v315_v33 }
  0x39   : > { %1960 = vmatmul.mubr.msk.bf16.gmra.mxu0 %vm382_vm0, %v316_v42 }
  0x3a   : > { %1963 = vmatprep.mubr.msk.bf16.mxu0 %vm382_vm0, %v317_v43 }
  0x41   : > { %1964 = vmatmul.mubr.msk.bf16.gmra.mxu0 %vm382_vm0, %v318_v52 }
  0x42   : > { %1967 = vmatprep.mubr.msk.bf16.mxu0 %vm382_vm0, %v319_v53 }
  0x49   : > { %1968 = vmatmul.mubr.msk.bf16.gmra.mxu0 %vm382_vm0, %v320_v62 }
  0x4a   : > { %1971 = vmatprep.mubr.msk.bf16.mxu0 %vm382_vm0, %v321_v63 }
  0x51   : > { %1972 = vmatmul.mubr.msk.bf16.gmra.mxu0 %vm382_vm0, %v322_v8 }
  0x52   : > { %1975 = vmatprep.mubr.msk.bf16.mxu0 %vm382_vm0, %v323_v9 }
  0x59   : > { %1976 = vmatmul.mubr.msk.bf16.gmra.mxu0 %vm382_vm0, %v324_v18 }
  0x5a   : > { %1979 = vmatprep.mubr.msk.bf16.mxu0 %vm382_vm0, %v325_v19 }
  0x61   : > { %1980 = vmatmul.mubr.msk.bf16.gmra.mxu0 %vm382_vm0, %v326_v24 }
  0xe9   : > { %v1953_v29 = vpop.f32.mrf.mxu0 }
  0xea   : > { %v474_v30 = vadd.f32 %v1953_v29, %v2375_v28 }
  0xeb   : > { %v465_v31 = vpop.f32.mrf.mxu0 }
  0xec   : > { %v466_v32 = vadd.f32 %v2375_v28, %v465_v31  ;;  %v1830_v33 = vpack.c.bf16 %v474_v30, %v474_v30  ;;  %v594_v46 = vmax.f32 %v474_v30, 0.0 }
  0xed   : > { %v1954_v34 = vpop.f32.mrf.mxu0 }
  0xee   : > { %v477_v35 = vadd.f32 %v1954_v34, %v2375_v28  ;;  %1004 = vrot.lane.b32.xlu1 %v1830_v33, %s2217_s16  ;;  %v1828_v36 = vpack.c.bf16 %v466_v32, %v466_v32  ;;  %v592_v42 = vmax.f32 %v466_v32, 0.0 }
  0xef   : > { %v468_v37 = vpop.f32.mrf.mxu0 }
  0xf0   : > { %v1831_v38 = vpack.c.bf16 %v477_v35, %v477_v35  ;;  %v469_v39 = vadd.f32 %v2375_v28, %v468_v37  ;;  %1000 = vrot.lane.b32.xlu0 %v1828_v36, %s2217_s16  ;;  %v595_v40 = vmax.f32 %v477_v35, 0.0 }
  0xf1   : > { %v1957_v41 = vpop.f32.mrf.mxu0 }
  0xf2   : > { %v593_v43 = vmax.f32 %v469_v39, 0.0  ;;  %v1829_v44 = vpack.c.bf16 %v469_v39, %v469_v39  ;;  %v490_v45 = vadd.f32 %v1957_v41, %v2375_v28  ;;  %1006 = vrot.lane.b32.xlu1 %v1831_v38, %s2217_s16  ;;  %v625_v49 = vpack.c.bf16 %v595_v40, %v594_v46 }
  0xf3   : > { %v481_v47 = vpop.f32.mrf.mxu0 }
  0xf4   : > { %1002 = vrot.lane.b32.xlu0 %v1829_v44, %s2217_s16  ;;  %v624_v48 = vpack.c.bf16 %v593_v43, %v592_v42  ;;  %v1834_v51 = vpack.c.bf16 %v490_v45, %v490_v45  ;;  %v482_v52 = vadd.f32 %v2375_v28, %v481_v47  ;;  %v598_v63 = vmax.f32 %v490_v45, 0.0 }
  0xf5   : > { %v1958_v50 = vpop.f32.mrf.mxu0 }
  0xf6   : > { %v493_v53 = vadd.f32 %v1958_v50, %v2375_v28  ;;  %1995 = vmatprep.mubr.msk.bf16.mxu1 %vm382_vm0, %v624_v48  ;;  %v596_v59 = vmax.f32 %v482_v52, 0.0  ;;  %v1832_v60 = vpack.c.bf16 %v482_v52, %v482_v52 }
  0xf7   : > { %v484_v54 = vpop.f32.mrf.mxu0  ;;  %1996 = vmatmul.mubr.msk.bf16.vlgmr.msra.gmra.mxu1 %vm382_vm0, %v625_v49 }
  0xf8   : > { %v1835_v55 = vpack.c.bf16 %v493_v53, %v493_v53  ;;  %v485_v56 = vadd.f32 %v2375_v28, %v484_v54  ;;  %1012 = vrot.lane.b32.xlu0 %v1834_v51, %s2217_s16  ;;  %v599_v57 = vmax.f32 %v493_v53, 0.0 }
  0xf9   : > { %v1961_v58 = vpop.f32.mrf.mxu0 }
  0xfa   : > { %v597_v61 = vmax.f32 %v485_v56, 0.0  ;;  %v506_v62 = vadd.f32 %v1961_v58, %v2375_v28  ;;  %1014 = vrot.lane.b32.xlu1 %v1835_v55, %s2217_s16  ;;  %v1833_v2 = vpack.c.bf16 %v485_v56, %v485_v56  ;;  %v627_v3 = vpack.c.bf16 %v599_v57, %v598_v63 }
  0xfb   : > { %v497_v0 = vpop.f32.mrf.mxu0 }
  0xfc   : > { %v626_v1 = vpack.c.bf16 %v597_v61, %v596_v59  ;;  %1008 = vrot.lane.b32.xlu0 %v1832_v60, %s2217_s16  ;;  %v1838_v5 = vpack.c.bf16 %v506_v62, %v506_v62  ;;  %v498_v6 = vadd.f32 %v2375_v28, %v497_v0  ;;  %v602_v17 = vmax.f32 %v506_v62, 0.0 }
  0xfd   : > { %v1962_v4 = vpop.f32.mrf.mxu0 }
  0xfe   : > { %v509_v7 = vadd.f32 %v1962_v4, %v2375_v28  ;;  %1010 = vrot.lane.b32.xlu1 %v1833_v2, %s2217_s16  ;;  %1999 = vmatprep.mubr.msk.bf16.mxu1 %vm382_vm0, %v626_v1  ;;  %v600_v13 = vmax.f32 %v498_v6, 0.0  ;;  %v1836_v14 = vpack.c.bf16 %v498_v6, %v498_v6 }
  0xff   : > { %v500_v8 = vpop.f32.mrf.mxu0  ;;  %2000 = vmatmul.mubr.msk.bf16.gmra.mxu1 %vm382_vm0, %v627_v3 }
 0x100   : > { %v1839_v9 = vpack.c.bf16 %v509_v7, %v509_v7  ;;  %v501_v10 = vadd.f32 %v2375_v28, %v500_v8  ;;  %1020 = vrot.lane.b32.xlu0 %v1838_v5, %s2217_s16  ;;  %v603_v11 = vmax.f32 %v509_v7, 0.0 }
 0x101   : > { %v1965_v12 = vpop.f32.mrf.mxu0 }
 0x102   : > { %v601_v15 = vmax.f32 %v501_v10, 0.0  ;;  %v522_v16 = vadd.f32 %v1965_v12, %v2375_v28  ;;  %1022 = vrot.lane.b32.xlu1 %v1839_v9, %s2217_s16  ;;  %v1837_v20 = vpack.c.bf16 %v501_v10, %v501_v10  ;;  %v629_v21 = vpack.c.bf16 %v603_v11, %v602_v17 }
 0x103   : > { %v513_v18 = vpop.f32.mrf.mxu0 }
 0x104   : > { %v628_v19 = vpack.c.bf16 %v601_v15, %v600_v13  ;;  %1016 = vrot.lane.b32.xlu0 %v1836_v14, %s2217_s16  ;;  %v1842_v23 = vpack.c.bf16 %v522_v16, %v522_v16  ;;  %v514_v24 = vadd.f32 %v2375_v28, %v513_v18  ;;  %v606_v36 = vmax.f32 %v522_v16, 0.0 }
 0x105   : > { %v1966_v22 = vpop.f32.mrf.mxu0 }
 0x106   : > { %v525_v25 = vadd.f32 %v1966_v22, %v2375_v28  ;;  %1018 = vrot.lane.b32.xlu1 %v1837_v20, %s2217_s16  ;;  %2003 = vmatprep.mubr.msk.bf16.mxu1 %vm382_vm0, %v628_v19  ;;  %v604_v32 = vmax.f32 %v514_v24, 0.0  ;;  %v1840_v33 = vpack.c.bf16 %v514_v24, %v514_v24 }
 0x107   : > { %v516_v26 = vpop.f32.mrf.mxu0  ;;  %2004 = vmatmul.mubr.msk.bf16.gmra.mxu1 %vm382_vm0, %v629_v21 }
 0x108   : > { %v1843_v27 = vpack.c.bf16 %v525_v25, %v525_v25  ;;  %v517_v29 = vadd.f32 %v2375_v28, %v516_v26  ;;  %1028 = vrot.lane.b32.xlu0 %v1842_v23, %s2217_s16  ;;  %v607_v30 = vmax.f32 %v525_v25, 0.0 }
 0x109   : > { %v1969_v31 = vpop.f32.mrf.mxu0 }
 0x10a   : > { %v605_v34 = vmax.f32 %v517_v29, 0.0  ;;  %v538_v35 = vadd.f32 %v1969_v31, %v2375_v28  ;;  %1030 = vrot.lane.b32.xlu1 %v1843_v27, %s2217_s16  ;;  %v1841_v39 = vpack.c.bf16 %v517_v29, %v517_v29  ;;  %v631_v40 = vpack.c.bf16 %v607_v30, %v606_v36 }
 0x10b   : > { %v529_v37 = vpop.f32.mrf.mxu0 }
 0x10c   : > { %v630_v38 = vpack.c.bf16 %v605_v34, %v604_v32  ;;  %1024 = vrot.lane.b32.xlu0 %v1840_v33, %s2217_s16  ;;  %v1846_v42 = vpack.c.bf16 %v538_v35, %v538_v35  ;;  %v530_v43 = vadd.f32 %v2375_v28, %v529_v37  ;;  %v610_v54 = vmax.f32 %v538_v35, 0.0 }
 0x10d   : > { %v1970_v41 = vpop.f32.mrf.mxu0 }
 0x10e   : > { %v541_v44 = vadd.f32 %v1970_v41, %v2375_v28  ;;  %1026 = vrot.lane.b32.xlu1 %v1841_v39, %s2217_s16  ;;  %2007 = vmatprep.mubr.msk.bf16.mxu1 %vm382_vm0, %v630_v38  ;;  %v608_v50 = vmax.f32 %v530_v43, 0.0  ;;  %v1844_v51 = vpack.c.bf16 %v530_v43, %v530_v43 }
 0x10f   : > { %v532_v45 = vpop.f32.mrf.mxu0  ;;  %2008 = vmatmul.mubr.msk.bf16.gmra.mxu1 %vm382_vm0, %v631_v40 }
 0x110   : > { %v1847_v46 = vpack.c.bf16 %v541_v44, %v541_v44  ;;  %v533_v47 = vadd.f32 %v2375_v28, %v532_v45  ;;  %1036 = vrot.lane.b32.xlu0 %v1846_v42, %s2217_s16  ;;  %v611_v48 = vmax.f32 %v541_v44, 0.0 }
 0x111   : > { %v1973_v49 = vpop.f32.mrf.mxu0 }
 0x112   : > { %v609_v52 = vmax.f32 %v533_v47, 0.0  ;;  %v554_v53 = vadd.f32 %v1973_v49, %v2375_v28  ;;  %1038 = vrot.lane.b32.xlu1 %v1847_v46, %s2217_s16  ;;  %v1845_v57 = vpack.c.bf16 %v533_v47, %v533_v47  ;;  %v633_v58 = vpack.c.bf16 %v611_v48, %v610_v54 }
 0x113   : > { %v545_v55 = vpop.f32.mrf.mxu0 }
 0x114   : > { %v632_v56 = vpack.c.bf16 %v609_v52, %v608_v50  ;;  %1032 = vrot.lane.b32.xlu0 %v1844_v51, %s2217_s16  ;;  %v1850_v60 = vpack.c.bf16 %v554_v53, %v554_v53  ;;  %v546_v61 = vadd.f32 %v2375_v28, %v545_v55  ;;  %v614_v8 = vmax.f32 %v554_v53, 0.0 }
 0x115   : > { %v1974_v59 = vpop.f32.mrf.mxu0 }
 0x116   : > { %v557_v62 = vadd.f32 %v1974_v59, %v2375_v28  ;;  %1034 = vrot.lane.b32.xlu1 %v1845_v57, %s2217_s16  ;;  %2011 = vmatprep.mubr.msk.bf16.mxu1 %vm382_vm0, %v632_v56  ;;  %v612_v4 = vmax.f32 %v546_v61, 0.0  ;;  %v1848_v5 = vpack.c.bf16 %v546_v61, %v546_v61 }
 0x117   : > { %v548_v63 = vpop.f32.mrf.mxu0  ;;  %2012 = vmatmul.mubr.msk.bf16.gmra.mxu1 %vm382_vm0, %v633_v58 }
 0x118   : > { %v1851_v0 = vpack.c.bf16 %v557_v62, %v557_v62  ;;  %v549_v1 = vadd.f32 %v2375_v28, %v548_v63  ;;  %1044 = vrot.lane.b32.xlu0 %v1850_v60, %s2217_s16  ;;  %v615_v2 = vmax.f32 %v557_v62, 0.0 }
 0x119   : > { %v1977_v3 = vpop.f32.mrf.mxu0 }
 0x11a   : > { %v613_v6 = vmax.f32 %v549_v1, 0.0  ;;  %v570_v7 = vadd.f32 %v1977_v3, %v2375_v28  ;;  %1046 = vrot.lane.b32.xlu1 %v1851_v0, %s2217_s16  ;;  %v1849_v11 = vpack.c.bf16 %v549_v1, %v549_v1  ;;  %v635_v12 = vpack.c.bf16 %v615_v2, %v614_v8 }
 0x11b   : > { %v561_v9 = vpop.f32.mrf.mxu0 }
 0x11c   : > { %v634_v10 = vpack.c.bf16 %v613_v6, %v612_v4  ;;  %1040 = vrot.lane.b32.xlu0 %v1848_v5, %s2217_s16  ;;  %v1854_v14 = vpack.c.bf16 %v570_v7, %v570_v7  ;;  %v562_v15 = vadd.f32 %v2375_v28, %v561_v9  ;;  %v618_v26 = vmax.f32 %v570_v7, 0.0 }
 0x11d   : > { %v1978_v13 = vpop.f32.mrf.mxu0 }
 0x11e   : > { %v573_v16 = vadd.f32 %v1978_v13, %v2375_v28  ;;  %1042 = vrot.lane.b32.xlu1 %v1849_v11, %s2217_s16  ;;  %2015 = vmatprep.mubr.msk.bf16.mxu1 %vm382_vm0, %v634_v10  ;;  %v616_v22 = vmax.f32 %v562_v15, 0.0  ;;  %v1852_v23 = vpack.c.bf16 %v562_v15, %v562_v15 }
 0x11f   : > { %v564_v17 = vpop.f32.mrf.mxu0  ;;  %2016 = vmatmul.mubr.msk.bf16.gmra.mxu1 %vm382_vm0, %v635_v12 }
 0x120   : > { %v1855_v18 = vpack.c.bf16 %v573_v16, %v573_v16  ;;  %v565_v19 = vadd.f32 %v2375_v28, %v564_v17  ;;  %1052 = vrot.lane.b32.xlu0 %v1854_v14, %s2217_s16  ;;  %v619_v20 = vmax.f32 %v573_v16, 0.0  ;;  %v2527_v14 = vld [vmem:[%s2796_s4] ss:$0 sm:$0xff] }
 0x121   : > { %v1981_v21 = vpop.f32.mrf.mxu0 }
 0x122   : > { %v617_v24 = vmax.f32 %v565_v19, 0.0  ;;  %v586_v25 = vadd.f32 %v1981_v21, %v2375_v28  ;;  %1054 = vrot.lane.b32.xlu1 %v1855_v18, %s2217_s16  ;;  %v1853_v30 = vpack.c.bf16 %v565_v19, %v565_v19  ;;  %v637_v31 = vpack.c.bf16 %v619_v20, %v618_v26 }
 0x123   : > { %v577_v27 = vpop.f32.mrf.mxu0 }
 0x124   : > { %v636_v29 = vpack.c.bf16 %v617_v24, %v616_v22  ;;  %1048 = vrot.lane.b32.xlu0 %v1852_v23, %s2217_s16  ;;  %v1858_v33 = vpack.c.bf16 %v586_v25, %v586_v25  ;;  %v578_v34 = vadd.f32 %v2375_v28, %v577_v27  ;;  %v622_v43 = vmax.f32 %v586_v25, 0.0 }
 0x125   : > { %v1982_v32 = vpop.f32.mrf.mxu0 }
 0x126   : > { %v589_v35 = vadd.f32 %v1982_v32, %v2375_v28  ;;  %1050 = vrot.lane.b32.xlu1 %v1853_v30, %s2217_s16  ;;  %2019 = vmatprep.mubr.msk.bf16.mxu1 %vm382_vm0, %v636_v29  ;;  %v620_v40 = vmax.f32 %v578_v34, 0.0  ;;  %v1856_v41 = vpack.c.bf16 %v578_v34, %v578_v34 }
 0x127   : > { %v580_v36 = vpop.f32.mrf.mxu0  ;;  %2020 = vmatmul.mubr.msk.bf16.gmra.mxu1 %vm382_vm0, %v637_v31 }
 0x128   : > { %v1859_v37 = vpack.c.bf16 %v589_v35, %v589_v35  ;;  %v581_v38 = vadd.f32 %v2375_v28, %v580_v36  ;;  %1060 = vrot.lane.b32.xlu0 %v1858_v33, %s2217_s16  ;;  %v623_v39 = vmax.f32 %v589_v35, 0.0 }
 0x12a   : > { %v621_v42 = vmax.f32 %v581_v38, 0.0  ;;  %1062 = vrot.lane.b32.xlu1 %v1859_v37, %s2217_s16  ;;  %v1857_v45 = vpack.c.bf16 %v581_v38, %v581_v38  ;;  %v639_v46 = vpack.c.bf16 %v623_v39, %v622_v43 }
 0x12c   : > { %v638_v44 = vpack.c.bf16 %v621_v42, %v620_v40  ;;  %1056 = vrot.lane.b32.xlu0 %v1856_v41, %s2217_s16 }
 0x12e   : > { %1058 = vrot.lane.b32.xlu1 %v1857_v45, %s2217_s16  ;;  %2023 = vmatprep.mubr.msk.bf16.mxu1 %vm382_vm0, %v638_v44 }
 0x12f   : > { %2024 = vmatmul.mubr.msk.bf16.gmra.mxu1 %vm382_vm0, %v639_v46 }
 0x160   : > { %v1005_v28 = vpop.permute.xlu1 %1004 }
 0x161   : > { %1099 = vst.msk [vmem:[%s2458_s23 + $0x8] sm:$0xf] %vm1096_vm1, %v1005_v28 }
 0x162   : > { %v1001_v47 = vpop.permute.xlu0 %1000 }
 0x163   : > { %1097 = vst.msk [vmem:[%s2458_s23] sm:$0xf] %vm1096_vm1, %v1001_v47 }
 0x164   : > { %v1007_v48 = vpop.permute.xlu1 %1006 }
 0x165   : > { %1100 = vst.msk [vmem:[%s2458_s23 + $0xc] sm:$0xf] %vm1096_vm1, %v1007_v48 }
 0x166   : > { %v1003_v49 = vpop.permute.xlu0 %1002 }
 0x167   : > { %1098 = vst.msk [vmem:[%s2458_s23 + $0x4] sm:$0xf] %vm1096_vm1, %v1003_v49 }
 0x16a   : > { %v1013_v50 = vpop.permute.xlu0 %1012 }
 0x16b   : > { %1103 = vst.msk [vmem:[%s2458_s23 + $0x18] sm:$0xf] %vm1096_vm1, %v1013_v50 }
 0x16c   : > { %v1015_v51 = vpop.permute.xlu1 %1014 }
 0x16d   : > { %1104 = vst.msk [vmem:[%s2458_s23 + $0x1c] sm:$0xf] %vm1096_vm1, %v1015_v51 }
 0x16e   : > { %v1009_v52 = vpop.permute.xlu0 %1008 }
 0x16f   : > { %1101 = vst.msk [vmem:[%s2458_s23 + $0x10] sm:$0xf] %vm1096_vm1, %v1009_v52 }
 0x170   : > { %v1011_v53 = vpop.permute.xlu1 %1010 }
 0x171   : > { %1102 = vst.msk [vmem:[%s2458_s23 + $0x14] sm:$0xf] %vm1096_vm1, %v1011_v53 }
 0x172   : > { %v1021_v54 = vpop.permute.xlu0 %1020 }
 0x173   : > { %1107 = vst.msk [vmem:[%s2458_s23 + $0x28] sm:$0xf] %vm1096_vm1, %v1021_v54 }
 0x174   : > { %v1023_v55 = vpop.permute.xlu1 %1022 }
 0x175   : > { %1108 = vst.msk [vmem:[%s2458_s23 + $0x2c] sm:$0xf] %vm1096_vm1, %v1023_v55 }
 0x176   : > { %v1017_v56 = vpop.permute.xlu0 %1016 }
 0x177   : > { %1105 = vst.msk [vmem:[%s2458_s23 + $0x20] sm:$0xf] %vm1096_vm1, %v1017_v56 }
 0x178   : > { %v1019_v57 = vpop.permute.xlu1 %1018 }
 0x179   : > { %1106 = vst.msk [vmem:[%s2458_s23 + $0x24] sm:$0xf] %vm1096_vm1, %v1019_v57 }
 0x17a   : > { %v1029_v58 = vpop.permute.xlu0 %1028 }
 0x17b   : > { %1111 = vst.msk [vmem:[%s2458_s23 + $0x38] sm:$0xf] %vm1096_vm1, %v1029_v58 }
 0x17c   : > { %v1031_v59 = vpop.permute.xlu1 %1030 }
 0x17d   : > { %1112 = vst.msk [vmem:[%s2458_s23 + $0x3c] sm:$0xf] %vm1096_vm1, %v1031_v59 }
 0x17e   : > { %v1025_v60 = vpop.permute.xlu0 %1024 }
 0x17f   : > { %1109 = vst.msk [vmem:[%s2458_s23 + $0x30] sm:$0xf] %vm1096_vm1, %v1025_v60 }
 0x180   : > { %v1027_v61 = vpop.permute.xlu1 %1026 }
 0x181   : > { %1110 = vst.msk [vmem:[%s2458_s23 + $0x34] sm:$0xf] %vm1096_vm1, %v1027_v61 }
 0x182   : > { %v1037_v62 = vpop.permute.xlu0 %1036 }
 0x183   : > { %1115 = vst.msk [vmem:[%s2458_s23 + $0x48] sm:$0xf] %vm1096_vm1, %v1037_v62 }
 0x184   : > { %v1039_v63 = vpop.permute.xlu1 %1038 }
 0x185   : > { %1116 = vst.msk [vmem:[%s2458_s23 + $0x4c] sm:$0xf] %vm1096_vm1, %v1039_v63 }
 0x186   : > { %v1033_v0 = vpop.permute.xlu0 %1032 }
 0x187   : > { %1113 = vst.msk [vmem:[%s2458_s23 + $0x40] sm:$0xf] %vm1096_vm1, %v1033_v0 }
 0x188   : > { %v1035_v1 = vpop.permute.xlu1 %1034 }
 0x189   : > { %1114 = vst.msk [vmem:[%s2458_s23 + $0x44] sm:$0xf] %vm1096_vm1, %v1035_v1 }
 0x18a   : > { %v1045_v2 = vpop.permute.xlu0 %1044 }
 0x18b   : > { %1119 = vst.msk [vmem:[%s2458_s23 + $0x58] sm:$0xf] %vm1096_vm1, %v1045_v2 }
 0x18c   : > { %v1047_v3 = vpop.permute.xlu1 %1046 }
 0x18d   : > { %1120 = vst.msk [vmem:[%s2458_s23 + $0x5c] sm:$0xf] %vm1096_vm1, %v1047_v3 }
 0x18e   : > { %v1041_v4 = vpop.permute.xlu0 %1040 }
 0x18f   : > { %1117 = vst.msk [vmem:[%s2458_s23 + $0x50] sm:$0xf] %vm1096_vm1, %v1041_v4 }
 0x190   : > { %v1043_v5 = vpop.permute.xlu1 %1042 }
 0x191   : > { %1118 = vst.msk [vmem:[%s2458_s23 + $0x54] sm:$0xf] %vm1096_vm1, %v1043_v5 }
 0x192   : > { %v1053_v6 = vpop.permute.xlu0 %1052 }
 0x193   : > { %1123 = vst.msk [vmem:[%s2458_s23 + $0x68] sm:$0xf] %vm1096_vm1, %v1053_v6 }
 0x194   : > { %v1055_v7 = vpop.permute.xlu1 %1054 }
 0x195   : > { %1124 = vst.msk [vmem:[%s2458_s23 + $0x6c] sm:$0xf] %vm1096_vm1, %v1055_v7 }
 0x196   : > { %v1049_v8 = vpop.permute.xlu0 %1048 }
 0x197   : > { %1121 = vst.msk [vmem:[%s2458_s23 + $0x60] sm:$0xf] %vm1096_vm1, %v1049_v8 }
 0x198   : > { %v1051_v9 = vpop.permute.xlu1 %1050 }
 0x199   : > { %1122 = vst.msk [vmem:[%s2458_s23 + $0x64] sm:$0xf] %vm1096_vm1, %v1051_v9 }
 0x19a   : > { %v1061_v10 = vpop.permute.xlu0 %1060 }
 0x19b   : > { %1127 = vst.msk [vmem:[%s2458_s23 + $0x78] sm:$0xf] %vm1096_vm1, %v1061_v10 }
 0x19c   : > { %v1063_v11 = vpop.permute.xlu1 %1062 }
 0x19d   : > { %1128 = vst.msk [vmem:[%s2458_s23 + $0x7c] sm:$0xf] %vm1096_vm1, %v1063_v11 }
 0x19e   : > { %v1057_v12 = vpop.permute.xlu0 %1056 }
 0x19f   : > { %1125 = vst.msk [vmem:[%s2458_s23 + $0x70] sm:$0xf] %vm1096_vm1, %v1057_v12 }
 0x1a0   : > { %v1059_v13 = vpop.permute.xlu1 %1058 }
 0x1a1   : > { %1126 = vst.msk [vmem:[%s2458_s23 + $0x74] sm:$0xf] %vm1096_vm1, %v1059_v13 }
 0x1b7   : > { %v1997_v15 = vpop.f32.mrf.mxu1 }
 0x1b8   : > { %v786_v16 = vadd.f32 %v1997_v15, %v2527_v14 }
 0x1b9   : > { %v777_v17 = vpop.f32.mrf.mxu1 }
 0x1ba   : > { %v1862_v18 = vpack.c.bf16 %v786_v16, %v786_v16  ;;  %v778_v19 = vadd.f32 %v2527_v14, %v777_v17 }
 0x1bb   : > { %v1998_v20 = vpop.f32.mrf.mxu1 }
 0x1bc   : > { %v789_v21 = vadd.f32 %v1998_v20, %v2527_v14  ;;  %1229 = vrot.lane.b32.xlu0 %v1862_v18, %s2218_s27  ;;  %v1860_v23 = vpack.c.bf16 %v778_v19, %v778_v19 }
 0x1bd   : > { %v780_v22 = vpop.f32.mrf.mxu1 }
 0x1be   : > { %v1863_v24 = vpack.c.bf16 %v789_v21, %v789_v21  ;;  %v781_v25 = vadd.f32 %v2527_v14, %v780_v22 }
 0x1bf   : > { %v2001_v26 = vpop.f32.mrf.mxu1 }
 0x1c0   : > { %v802_v27 = vadd.f32 %v2001_v26, %v2527_v14  ;;  %1231 = vrot.lane.b32.xlu1 %v1863_v24, %s2218_s27  ;;  %1225 = vrot.lane.b32.xlu0 %v1860_v23, %s2218_s27  ;;  %v1861_v30 = vpack.c.bf16 %v781_v25, %v781_v25 }
 0x1c1   : > { %v793_v29 = vpop.f32.mrf.mxu1 }
 0x1c2   : > { %v1866_v31 = vpack.c.bf16 %v802_v27, %v802_v27  ;;  %v794_v32 = vadd.f32 %v2527_v14, %v793_v29 }
 0x1c3   : > { %v2002_v33 = vpop.f32.mrf.mxu1 }
 0x1c4   : > { %v805_v34 = vadd.f32 %v2002_v33, %v2527_v14  ;;  %1227 = vrot.lane.b32.xlu1 %v1861_v30, %s2218_s27  ;;  %1237 = vrot.lane.b32.xlu0 %v1866_v31, %s2218_s27  ;;  %v1864_v36 = vpack.c.bf16 %v794_v32, %v794_v32 }
 0x1c5   : > { %v796_v35 = vpop.f32.mrf.mxu1 }
 0x1c6   : > { %v1867_v37 = vpack.c.bf16 %v805_v34, %v805_v34  ;;  %v797_v38 = vadd.f32 %v2527_v14, %v796_v35 }
 0x1c7   : > { %v2005_v39 = vpop.f32.mrf.mxu1 }
 0x1c8   : > { %v818_v40 = vadd.f32 %v2005_v39, %v2527_v14  ;;  %1239 = vrot.lane.b32.xlu1 %v1867_v37, %s2218_s27  ;;  %1233 = vrot.lane.b32.xlu0 %v1864_v36, %s2218_s27  ;;  %v1865_v42 = vpack.c.bf16 %v797_v38, %v797_v38 }
 0x1c9   : > { %v809_v41 = vpop.f32.mrf.mxu1 }
 0x1ca   : > { %v1870_v43 = vpack.c.bf16 %v818_v40, %v818_v40  ;;  %v810_v44 = vadd.f32 %v2527_v14, %v809_v41 }
 0x1cb   : > { %v2006_v45 = vpop.f32.mrf.mxu1 }
 0x1cc   : > { %v821_v46 = vadd.f32 %v2006_v45, %v2527_v14  ;;  %1235 = vrot.lane.b32.xlu1 %v1865_v42, %s2218_s27  ;;  %1245 = vrot.lane.b32.xlu0 %v1870_v43, %s2218_s27  ;;  %v1868_v47 = vpack.c.bf16 %v810_v44, %v810_v44 }
 0x1cd   : > { %v812_v28 = vpop.f32.mrf.mxu1 }
 0x1ce   : > { %v1871_v48 = vpack.c.bf16 %v821_v46, %v821_v46  ;;  %v813_v49 = vadd.f32 %v2527_v14, %v812_v28 }
 0x1cf   : > { %v2009_v50 = vpop.f32.mrf.mxu1 }
 0x1d0   : > { %v834_v51 = vadd.f32 %v2009_v50, %v2527_v14  ;;  %1247 = vrot.lane.b32.xlu1 %v1871_v48, %s2218_s27  ;;  %1241 = vrot.lane.b32.xlu0 %v1868_v47, %s2218_s27  ;;  %v1869_v53 = vpack.c.bf16 %v813_v49, %v813_v49 }
 0x1d1   : > { %v825_v52 = vpop.f32.mrf.mxu1 }
 0x1d2   : > { %v1874_v54 = vpack.c.bf16 %v834_v51, %v834_v51  ;;  %v826_v55 = vadd.f32 %v2527_v14, %v825_v52 }
 0x1d3   : > { %v2010_v56 = vpop.f32.mrf.mxu1 }
 0x1d4   : > { %v837_v57 = vadd.f32 %v2010_v56, %v2527_v14  ;;  %1243 = vrot.lane.b32.xlu1 %v1869_v53, %s2218_s27  ;;  %1253 = vrot.lane.b32.xlu0 %v1874_v54, %s2218_s27  ;;  %v1872_v59 = vpack.c.bf16 %v826_v55, %v826_v55 }
 0x1d5   : > { %v828_v58 = vpop.f32.mrf.mxu1 }
 0x1d6   : > { %v1875_v60 = vpack.c.bf16 %v837_v57, %v837_v57  ;;  %v829_v61 = vadd.f32 %v2527_v14, %v828_v58 }
 0x1d7   : > { %v2013_v62 = vpop.f32.mrf.mxu1 }
 0x1d8   : > { %v850_v63 = vadd.f32 %v2013_v62, %v2527_v14  ;;  %1255 = vrot.lane.b32.xlu1 %v1875_v60, %s2218_s27  ;;  %1249 = vrot.lane.b32.xlu0 %v1872_v59, %s2218_s27  ;;  %v1873_v1 = vpack.c.bf16 %v829_v61, %v829_v61 }
 0x1d9   : > { %v841_v0 = vpop.f32.mrf.mxu1 }
 0x1da   : > { %v1878_v2 = vpack.c.bf16 %v850_v63, %v850_v63  ;;  %v842_v3 = vadd.f32 %v2527_v14, %v841_v0 }
 0x1db   : > { %v2014_v4 = vpop.f32.mrf.mxu1 }
 0x1dc   : > { %v853_v5 = vadd.f32 %v2014_v4, %v2527_v14  ;;  %1251 = vrot.lane.b32.xlu1 %v1873_v1, %s2218_s27  ;;  %1261 = vrot.lane.b32.xlu0 %v1878_v2, %s2218_s27  ;;  %v1876_v7 = vpack.c.bf16 %v842_v3, %v842_v3 }
 0x1dd   : > { %v844_v6 = vpop.f32.mrf.mxu1 }
 0x1de   : > { %v1879_v8 = vpack.c.bf16 %v853_v5, %v853_v5  ;;  %v845_v9 = vadd.f32 %v2527_v14, %v844_v6 }
 0x1df   : > { %v2017_v10 = vpop.f32.mrf.mxu1 }
 0x1e0   : > { %v866_v11 = vadd.f32 %v2017_v10, %v2527_v14  ;;  %1263 = vrot.lane.b32.xlu1 %v1879_v8, %s2218_s27  ;;  %1257 = vrot.lane.b32.xlu0 %v1876_v7, %s2218_s27  ;;  %v1877_v13 = vpack.c.bf16 %v845_v9, %v845_v9 }
 0x1e1   : > { %v857_v12 = vpop.f32.mrf.mxu1 }
 0x1e2   : > { %v1882_v15 = vpack.c.bf16 %v866_v11, %v866_v11  ;;  %v858_v16 = vadd.f32 %v2527_v14, %v857_v12 }
 0x1e3   : > { %v2018_v17 = vpop.f32.mrf.mxu1 }
 0x1e4   : > { %v869_v18 = vadd.f32 %v2018_v17, %v2527_v14  ;;  %1259 = vrot.lane.b32.xlu1 %v1877_v13, %s2218_s27  ;;  %1269 = vrot.lane.b32.xlu0 %v1882_v15, %s2218_s27  ;;  %v1880_v20 = vpack.c.bf16 %v858_v16, %v858_v16 }
 0x1e5   : > { %v860_v19 = vpop.f32.mrf.mxu1 }
 0x1e6   : > { %v1883_v21 = vpack.c.bf16 %v869_v18, %v869_v18  ;;  %v861_v22 = vadd.f32 %v2527_v14, %v860_v19 }
 0x1e7   : > { %v2021_v23 = vpop.f32.mrf.mxu1 }
 0x1e8   : > { %v882_v24 = vadd.f32 %v2021_v23, %v2527_v14  ;;  %1271 = vrot.lane.b32.xlu1 %v1883_v21, %s2218_s27  ;;  %1265 = vrot.lane.b32.xlu0 %v1880_v20, %s2218_s27  ;;  %v1881_v26 = vpack.c.bf16 %v861_v22, %v861_v22 }
 0x1e9   : > { %v873_v25 = vpop.f32.mrf.mxu1 }
 0x1ea   : > { %v1886_v27 = vpack.c.bf16 %v882_v24, %v882_v24  ;;  %v874_v29 = vadd.f32 %v2527_v14, %v873_v25 }
 0x1eb   : > { %v2022_v30 = vpop.f32.mrf.mxu1 }
 0x1ec   : > { %v885_v31 = vadd.f32 %v2022_v30, %v2527_v14  ;;  %1267 = vrot.lane.b32.xlu1 %v1881_v26, %s2218_s27  ;;  %1277 = vrot.lane.b32.xlu0 %v1886_v27, %s2218_s27  ;;  %v1884_v33 = vpack.c.bf16 %v874_v29, %v874_v29 }
 0x1ed   : > { %v876_v32 = vpop.f32.mrf.mxu1 }
 0x1ee   : > { %v1887_v34 = vpack.c.bf16 %v885_v31, %v885_v31  ;;  %v877_v35 = vadd.f32 %v2527_v14, %v876_v32 }
 0x1ef   : > { %v2025_v36 = vpop.f32.mrf.mxu1 }
 0x1f0   : > { %1279 = vrot.lane.b32.xlu1 %v1887_v34, %s2218_s27  ;;  %1273 = vrot.lane.b32.xlu0 %v1884_v33, %s2218_s27  ;;  %v1885_v38 = vpack.c.bf16 %v877_v35, %v877_v35  ;;  %v898_v41 = vadd.f32 %v2025_v36, %v2527_v14 }
 0x1f1   : > { %v889_v37 = vpop.f32.mrf.mxu1 }
 0x1f2   : > { %v890_v39 = vadd.f32 %v2527_v14, %v889_v37  ;;  %v1890_v45 = vpack.c.bf16 %v898_v41, %v898_v41 }
 0x1f3   : > { %v2026_v40 = vpop.f32.mrf.mxu1 }
 0x1f4   : > { %v1888_v42 = vpack.c.bf16 %v890_v39, %v890_v39  ;;  %1275 = vrot.lane.b32.xlu1 %v1885_v38, %s2218_s27  ;;  %v901_v46 = vadd.f32 %v2026_v40, %v2527_v14 }
 0x1f5   : > { %v892_v43 = vpop.f32.mrf.mxu1 }
 0x1f6   : > { %v893_v44 = vadd.f32 %v2527_v14, %v892_v43  ;;  %1281 = vrot.lane.b32.xlu0 %v1888_v42, %s2218_s27  ;;  %v1891_v47 = vpack.c.bf16 %v901_v46, %v901_v46 }
 0x1f8   : > { %v1889_v28 = vpack.c.bf16 %v893_v44, %v893_v44 }
 0x1fa   : > { %1283 = vrot.lane.b32.xlu1 %v1889_v28, %s2218_s27  ;;  %1285 = vrot.lane.b32.xlu0 %v1890_v45, %s2218_s27 }
 0x1fe   : > { %1287 = vrot.lane.b32.xlu1 %v1891_v47, %s2218_s27 }
 0x22e   : > { %v1230_v48 = vpop.permute.xlu0 %1229 }
 0x22f   : > { %1324 = vst.msk [vmem:[%s2458_s23 + $0x8] sm:$0xf] %vm1321_vm2, %v1230_v48 }
 0x232   : > { %v1232_v49 = vpop.permute.xlu1 %1231  ;;  %v1226_v50 = vpop.permute.xlu0 %1225 }
 0x233   : > { %1325 = vst.msk [vmem:[%s2458_s23 + $0xc] sm:$0xf] %vm1321_vm2, %v1232_v49  ;;  %1322 = vst.msk [vmem:[%s2458_s23] sm:$0xf] %vm1321_vm2, %v1226_v50 }
 0x236   : > { %v1228_v14 = vpop.permute.xlu1 %1227  ;;  %v1238_v51 = vpop.permute.xlu0 %1237 }
 0x237   : > { %1323 = vst.msk [vmem:[%s2458_s23 + $0x4] sm:$0xf] %vm1321_vm2, %v1228_v14  ;;  %1328 = vst.msk [vmem:[%s2458_s23 + $0x18] sm:$0xf] %vm1321_vm2, %v1238_v51 }
 0x23a   : > { %v1240_v52 = vpop.permute.xlu1 %1239  ;;  %v1234_v53 = vpop.permute.xlu0 %1233 }
 0x23b   : > { %1329 = vst.msk [vmem:[%s2458_s23 + $0x1c] sm:$0xf] %vm1321_vm2, %v1240_v52  ;;  %1326 = vst.msk [vmem:[%s2458_s23 + $0x10] sm:$0xf] %vm1321_vm2, %v1234_v53 }
 0x23e   : > { %v1236_v54 = vpop.permute.xlu1 %1235  ;;  %v1246_v55 = vpop.permute.xlu0 %1245 }
 0x23f   : > { %1327 = vst.msk [vmem:[%s2458_s23 + $0x14] sm:$0xf] %vm1321_vm2, %v1236_v54  ;;  %1332 = vst.msk [vmem:[%s2458_s23 + $0x28] sm:$0xf] %vm1321_vm2, %v1246_v55 }
 0x242   : > { %v1248_v56 = vpop.permute.xlu1 %1247  ;;  %v1242_v57 = vpop.permute.xlu0 %1241 }
 0x243   : > { %1333 = vst.msk [vmem:[%s2458_s23 + $0x2c] sm:$0xf] %vm1321_vm2, %v1248_v56  ;;  %1330 = vst.msk [vmem:[%s2458_s23 + $0x20] sm:$0xf] %vm1321_vm2, %v1242_v57 }
 0x246   : > { %v1244_v58 = vpop.permute.xlu1 %1243  ;;  %v1254_v59 = vpop.permute.xlu0 %1253 }
 0x247   : > { %1331 = vst.msk [vmem:[%s2458_s23 + $0x24] sm:$0xf] %vm1321_vm2, %v1244_v58  ;;  %1336 = vst.msk [vmem:[%s2458_s23 + $0x38] sm:$0xf] %vm1321_vm2, %v1254_v59 }
 0x24a   : > { %v1256_v60 = vpop.permute.xlu1 %1255  ;;  %v1250_v61 = vpop.permute.xlu0 %1249 }
 0x24b   : > { %1337 = vst.msk [vmem:[%s2458_s23 + $0x3c] sm:$0xf] %vm1321_vm2, %v1256_v60  ;;  %1334 = vst.msk [vmem:[%s2458_s23 + $0x30] sm:$0xf] %vm1321_vm2, %v1250_v61 }
 0x24e   : > { %v1252_v62 = vpop.permute.xlu1 %1251  ;;  %v1262_v63 = vpop.permute.xlu0 %1261 }
 0x24f   : > { %1335 = vst.msk [vmem:[%s2458_s23 + $0x34] sm:$0xf] %vm1321_vm2, %v1252_v62  ;;  %1340 = vst.msk [vmem:[%s2458_s23 + $0x48] sm:$0xf] %vm1321_vm2, %v1262_v63 }
 0x252   : > { %v1264_v0 = vpop.permute.xlu1 %1263  ;;  %v1258_v1 = vpop.permute.xlu0 %1257 }
 0x253   : > { %1341 = vst.msk [vmem:[%s2458_s23 + $0x4c] sm:$0xf] %vm1321_vm2, %v1264_v0  ;;  %1338 = vst.msk [vmem:[%s2458_s23 + $0x40] sm:$0xf] %vm1321_vm2, %v1258_v1 }
 0x256   : > { %v1260_v2 = vpop.permute.xlu1 %1259  ;;  %v1270_v3 = vpop.permute.xlu0 %1269 }
 0x257   : > { %1339 = vst.msk [vmem:[%s2458_s23 + $0x44] sm:$0xf] %vm1321_vm2, %v1260_v2  ;;  %1344 = vst.msk [vmem:[%s2458_s23 + $0x58] sm:$0xf] %vm1321_vm2, %v1270_v3 }
 0x25a   : > { %v1272_v4 = vpop.permute.xlu1 %1271  ;;  %v1266_v5 = vpop.permute.xlu0 %1265 }
 0x25b   : > { %1345 = vst.msk [vmem:[%s2458_s23 + $0x5c] sm:$0xf] %vm1321_vm2, %v1272_v4  ;;  %1342 = vst.msk [vmem:[%s2458_s23 + $0x50] sm:$0xf] %vm1321_vm2, %v1266_v5 }
 0x25e   : > { %v1268_v6 = vpop.permute.xlu1 %1267  ;;  %v1278_v7 = vpop.permute.xlu0 %1277 }
 0x25f   : > { %1343 = vst.msk [vmem:[%s2458_s23 + $0x54] sm:$0xf] %vm1321_vm2, %v1268_v6  ;;  %1348 = vst.msk [vmem:[%s2458_s23 + $0x68] sm:$0xf] %vm1321_vm2, %v1278_v7 }
 0x262   : > { %v1280_v8 = vpop.permute.xlu1 %1279  ;;  %v1274_v9 = vpop.permute.xlu0 %1273 }
 0x263   : > { %1349 = vst.msk [vmem:[%s2458_s23 + $0x6c] sm:$0xf] %vm1321_vm2, %v1280_v8  ;;  %1346 = vst.msk [vmem:[%s2458_s23 + $0x60] sm:$0xf] %vm1321_vm2, %v1274_v9 }
 0x266   : > { %v1276_v10 = vpop.permute.xlu1 %1275 }
 0x267   : > { %1347 = vst.msk [vmem:[%s2458_s23 + $0x64] sm:$0xf] %vm1321_vm2, %v1276_v10 }
 0x268   : > { %v1282_v11 = vpop.permute.xlu0 %1281 }
 0x269   : > { %1350 = vst.msk [vmem:[%s2458_s23 + $0x70] sm:$0xf] %vm1321_vm2, %v1282_v11 }
 0x26c   : > { %v1284_v12 = vpop.permute.xlu1 %1283  ;;  %v1286_v13 = vpop.permute.xlu0 %1285 }
 0x26d   : > { %1351 = vst.msk [vmem:[%s2458_s23 + $0x74] sm:$0xf] %vm1321_vm2, %v1284_v12  ;;  %1352 = vst.msk [vmem:[%s2458_s23 + $0x78] sm:$0xf] %vm1321_vm2, %v1286_v13  ;;  %1360 = sbr.rel (!%p2274_p4) target bundleno = 686 (0x2ae), region = 44 }
 0x270   : > { %v1288_v15 = vpop.permute.xlu1 %1287 }
 0x271   : > { %1353 = vst.msk [vmem:[%s2458_s23 + $0x7c] sm:$0xf] %vm1321_vm2, %v1288_v15 }
 0x272   : > { %s2806_s28 = smov (!%p1363_p8, %s1362_s28), 32 }
 0x273   : > { %s1813_s9 = sshll.u32 %s2806_s28, 6 }
 0x274   : > { %p1816_p9 = scmp.eq.s32.totalorder %s1813_s9, 0 }
 0x275   : > { %s2670_s10 = sshrl.u32 (!%p1816_p9), %s2806_s28, 5 }
 0x276   : > { %1371 = sbr.rel (%p1816_p9) target bundleno = 686 (0x2ae), region = 48  ;;  %p1817_p10 = scmp.le.s32.totalorder (!%p1816_p9), %s2670_s10, 0 }
 0x27b   : > { %1650 = sbr.rel (%p1817_p10) target bundleno = 669 (0x29d), region = 120  ;;  %s2799_s21 = smov (!%p1817_p10), %s2664_s8 }
 0x27c   : > { %s2800_s26 = smov (!%p1817_p10), %s2458_s23  ;;  %s2679_s29 = smov (!%p1817_p10), 0  }
 0x27d   : > { %s2681_s11 = smov (!%p1817_p10), 0  }
 0x280 LB: >> { %v1388_v16 = vld [vmem:[%s2191_s26] sm:$0xf]  ;;  %v1390_v17 = vld [vmem:[%s2191_s26 + $0x4] sm:$0xf]  ;;  %v1392_v18 = vld [vmem:[%s2191_s26 + $0x8] sm:$0xf]  ;;  %s2199_s11 = sphi %s2681_s11, %s1382_s11   ;;  %s2195_s29 = sphi %s2679_s29, %s2801_s29   ;;  %s2191_s26 = sphi %s2800_s26, %s1457_s26   ;;  %s2187_s21 = sphi %s2799_s21, %s1458_s21  }
 0x281   : >> { %1389 = vst [vmem:[%s2187_s21] sm:$0xf] %v1388_v16  ;;  %1391 = vst [vmem:[%s2187_s21 + $0x4] sm:$0xf] %v1390_v17  ;;  %v1394_v19 = vld [vmem:[%s2191_s26 + $0xc] sm:$0xf]  ;;  %s1452_s12 = sadd.s32 1, %s2195_s29 }
 0x282   : >> { %1393 = vst [vmem:[%s2187_s21 + $0x8] sm:$0xf] %v1392_v18  ;;  %v1396_v20 = vld [vmem:[%s2191_s26 + $0x10] sm:$0xf]  ;;  %v1398_v21 = vld [vmem:[%s2191_s26 + $0x14] sm:$0xf]  ;;  %p1453_p11 = scmp.ge.s32.totalorder %s1452_s12, %s2670_s10 }
 0x283   : >> { %1395 = vst [vmem:[%s2187_s21 + $0xc] sm:$0xf] %v1394_v19  ;;  %1397 = vst [vmem:[%s2187_s21 + $0x10] sm:$0xf] %v1396_v20  ;;  %v1400_v22 = vld [vmem:[%s2191_s26 + $0x18] sm:$0xf] }
 0x284   : >> { %1399 = vst [vmem:[%s2187_s21 + $0x14] sm:$0xf] %v1398_v21  ;;  %v1402_v23 = vld [vmem:[%s2191_s26 + $0x1c] sm:$0xf]  ;;  %v1404_v24 = vld [vmem:[%s2191_s26 + $0x20] sm:$0xf] }
 0x285   : >> { %1401 = vst [vmem:[%s2187_s21 + $0x18] sm:$0xf] %v1400_v22  ;;  %1403 = vst [vmem:[%s2187_s21 + $0x1c] sm:$0xf] %v1402_v23  ;;  %v1406_v25 = vld [vmem:[%s2191_s26 + $0x24] sm:$0xf] }
 0x286   : >> { %1405 = vst [vmem:[%s2187_s21 + $0x20] sm:$0xf] %v1404_v24  ;;  %v1408_v26 = vld [vmem:[%s2191_s26 + $0x28] sm:$0xf]  ;;  %v1410_v27 = vld [vmem:[%s2191_s26 + $0x2c] sm:$0xf] }
 0x287   : >> { %1407 = vst [vmem:[%s2187_s21 + $0x24] sm:$0xf] %v1406_v25  ;;  %1409 = vst [vmem:[%s2187_s21 + $0x28] sm:$0xf] %v1408_v26  ;;  %v1412_v29 = vld [vmem:[%s2191_s26 + $0x30] sm:$0xf] }
 0x288   : >> { %1411 = vst [vmem:[%s2187_s21 + $0x2c] sm:$0xf] %v1410_v27  ;;  %v1414_v30 = vld [vmem:[%s2191_s26 + $0x34] sm:$0xf]  ;;  %v1416_v31 = vld [vmem:[%s2191_s26 + $0x38] sm:$0xf] }
 0x289   : >> { %1413 = vst [vmem:[%s2187_s21 + $0x30] sm:$0xf] %v1412_v29  ;;  %1415 = vst [vmem:[%s2187_s21 + $0x34] sm:$0xf] %v1414_v30  ;;  %v1418_v32 = vld [vmem:[%s2191_s26 + $0x3c] sm:$0xf] }
 0x28a   : >> { %1417 = vst [vmem:[%s2187_s21 + $0x38] sm:$0xf] %v1416_v31  ;;  %v1420_v33 = vld [vmem:[%s2191_s26 + $0x40] sm:$0xf]  ;;  %v1422_v34 = vld [vmem:[%s2191_s26 + $0x44] sm:$0xf] }
 0x28b   : >> { %1419 = vst [vmem:[%s2187_s21 + $0x3c] sm:$0xf] %v1418_v32  ;;  %1421 = vst [vmem:[%s2187_s21 + $0x40] sm:$0xf] %v1420_v33  ;;  %v1424_v35 = vld [vmem:[%s2191_s26 + $0x48] sm:$0xf] }
 0x28c   : >> { %1423 = vst [vmem:[%s2187_s21 + $0x44] sm:$0xf] %v1422_v34  ;;  %v1426_v36 = vld [vmem:[%s2191_s26 + $0x4c] sm:$0xf]  ;;  %v1428_v37 = vld [vmem:[%s2191_s26 + $0x50] sm:$0xf] }
 0x28d   : >> { %1425 = vst [vmem:[%s2187_s21 + $0x48] sm:$0xf] %v1424_v35  ;;  %1427 = vst [vmem:[%s2187_s21 + $0x4c] sm:$0xf] %v1426_v36  ;;  %v1430_v38 = vld [vmem:[%s2191_s26 + $0x54] sm:$0xf] }
 0x28e   : >> { %1429 = vst [vmem:[%s2187_s21 + $0x50] sm:$0xf] %v1428_v37  ;;  %v1432_v39 = vld [vmem:[%s2191_s26 + $0x58] sm:$0xf]  ;;  %v1434_v40 = vld [vmem:[%s2191_s26 + $0x5c] sm:$0xf] }
 0x28f   : >> { %1431 = vst [vmem:[%s2187_s21 + $0x54] sm:$0xf] %v1430_v38  ;;  %1433 = vst [vmem:[%s2187_s21 + $0x58] sm:$0xf] %v1432_v39  ;;  %v1436_v41 = vld [vmem:[%s2191_s26 + $0x60] sm:$0xf] }
 0x290   : >> { %1435 = vst [vmem:[%s2187_s21 + $0x5c] sm:$0xf] %v1434_v40  ;;  %v1438_v42 = vld [vmem:[%s2191_s26 + $0x64] sm:$0xf]  ;;  %v1440_v43 = vld [vmem:[%s2191_s26 + $0x68] sm:$0xf] }
 0x291   : >> { %1437 = vst [vmem:[%s2187_s21 + $0x60] sm:$0xf] %v1436_v41  ;;  %1439 = vst [vmem:[%s2187_s21 + $0x64] sm:$0xf] %v1438_v42  ;;  %v1442_v44 = vld [vmem:[%s2191_s26 + $0x6c] sm:$0xf] }
 0x292   : >> { %1441 = vst [vmem:[%s2187_s21 + $0x68] sm:$0xf] %v1440_v43  ;;  %v1444_v45 = vld [vmem:[%s2191_s26 + $0x70] sm:$0xf]  ;;  %v1446_v46 = vld [vmem:[%s2191_s26 + $0x74] sm:$0xf] }
 0x293   : >> { %1443 = vst [vmem:[%s2187_s21 + $0x6c] sm:$0xf] %v1442_v44  ;;  %1445 = vst [vmem:[%s2187_s21 + $0x70] sm:$0xf] %v1444_v45  ;;  %v1448_v28 = vld [vmem:[%s2191_s26 + $0x78] sm:$0xf] }
 0x294   : >> { %1447 = vst [vmem:[%s2187_s21 + $0x74] sm:$0xf] %v1446_v46  ;;  %v1450_v47 = vld [vmem:[%s2191_s26 + $0x7c] sm:$0xf]  ;;  %1449 = vst [vmem:[%s2187_s21 + $0x78] sm:$0xf] %v1448_v28 }
 0x295   : >> { %1451 = vst [vmem:[%s2187_s21 + $0x7c] sm:$0xf] %v1450_v47  ;;  %s2808_s12 = smov (%p1453_p11, %s1452_s12), 0  ;;  %s1382_s11 = sadd.s32 1, %s2199_s11  }
 0x296   : >> { %s1818_s13 = sshll.u32 %s2808_s12, 7  ;;  %p1381_p12 = scmp.ge.s32.totalorder %s1382_s11, %s2670_s10 }
 0x297   : >> { %s1457_s26 = scalar_lea.vmem %s2458_s23, %s1818_s13 [#allocation2]   ;;  %s1458_s21 = scalar_lea.vmem %s2664_s8, %s1818_s13  }
 0x298   : >> { %s2801_s29 = smov %s2808_s12  ;;  %1384 = sbr.rel (!%p1381_p12) target bundleno = 640 (0x280), region = 126 }
 0x29d PF: > { %s2774_s14 = sand.u32 31, %s2806_s28   ;;  %s1893_s15 = sshll.u32 %s2670_s10, 7 }
 0x29e   : > { %s1463_s16 = scalar_lea.vmem %s2458_s23, %s1893_s15 [#allocation2]   ;;  %s1465_s17 = scalar_lea.vmem %s2664_s8, %s1893_s15  }
 0x29f   : > { %p1823_p13 = scmp.le.s32.totalorder %s2774_s14, 0 }
 0x2a0   : > { %s2201_s20 = smov (!%p1823_p13), %s1465_s17   ;;  %s2205_s18 = smov (!%p1823_p13), %s1463_s16  }
 0x2a1   : > { %1664 = sbr.rel (%p1823_p13) target bundleno = 686 (0x2ae), region = 131  ;;  %s2209_s24 = smov (!%p1823_p13), 0  }
 0x2a2   : > { %s2213_s27 = smov (!%p1823_p13), 0  }
 0x2a6 LB: >> { %v1475_v48 = vld [vmem:[%s2207_s18] sm:$0xf]  ;;  %s1477_s28 = sadd.s32 1, %s2211_s24  ;;  %s1469_s27 = sadd.s32 1, %s2215_s27   ;;  %s2215_s27 = sphi %s2213_s27, %s1469_s27   ;;  %s2211_s24 = sphi %s2209_s24, %s2210_s24   ;;  %s2207_s18 = sphi %s2205_s18, %s1482_s18   ;;  %s2203_s20 = sphi %s2201_s20, %s1483_s20  }
 0x2a7   : >> { %1476 = vst [vmem:[%s2203_s20] sm:$0xf] %v1475_v48  ;;  %p1478_p0 = scmp.ge.s32.totalorder %s1477_s28, %s2774_s14  ;;  %p1468_p1 = scmp.ge.s32.totalorder %s1469_s27, %s2774_s14 }
 0x2a9   : >> { %s2810_s28 = smov (%p1478_p0, %s1477_s28), 0  ;;  %1471 = sbr.rel (!%p1468_p1) target bundleno = 678 (0x2a6), region = 137 }
 0x2aa   : >> { %s1824_s23 = sshll.u32 %s2810_s28, 2  ;;  %s2210_s24 = smov %s2810_s28  }
 0x2ab   : >> { %s1482_s18 = scalar_lea.vmem %s1463_s16, %s1824_s23 [#allocation2]   ;;  %s1483_s20 = scalar_lea.vmem %s1465_s17, %s1824_s23  }
 0x2ae PF: > { %p12_p2 = scmp.ge.s32.totalorder %s2264_s22, 4   ;;  %s2802_s18 = smov %s2179_s19 }
 0x2af   : > { %s2803_s19 = smov %s2272_s25  ;;  %s2804_s20 = smov %s2264_s22 }
 0x2b0   :  { %14 = sbr.rel (!%p12_p2) target bundleno = 2 (0x2), region = 148 }

</bundles_post_ra>
